<compile_context>
chip_gen: v7x
topology: tpu7x:2x2x1
jax: 0.10.0
libtpu: 0.0.40
codegen_flags: <defaults>
</compile_context>

<pallas_src>
import functools

import numpy as np
import jax
import jax.numpy as jnp
from jax import lax
from jax.experimental import pallas as pl
from jax.experimental.pallas import tpu as pltpu


# ----------------------------------------------------------------------------
# Kernels
# ----------------------------------------------------------------------------
def _ln_affine_kernel(x_ref, w_ref, b_ref, o_ref, *, eps, one_pass):
    x = x_ref[...].astype(jnp.float32)                  # (b_blk, C, t_blk)
    mu = jnp.mean(x, axis=1, keepdims=True)             # reduce over channels
    if one_pass:
        ex2 = jnp.mean(x * x, axis=1, keepdims=True)
        sigma = jnp.maximum(ex2 - mu * mu, 0.0)         # guard cancellation
        r = x - mu
    else:
        r = x - mu
        sigma = jnp.mean(r * r, axis=1, keepdims=True)  # biased variance
    y = r * lax.rsqrt(sigma + eps)                      # rsqrt -> EUP slot
    y = y * w_ref[...] + b_ref[...]                     # (C,1) broadcasts
    o_ref[...] = y.astype(o_ref.dtype)


def _ln_plain_kernel(x_ref, o_ref, *, eps, one_pass):
    x = x_ref[...].astype(jnp.float32)
    mu = jnp.mean(x, axis=1, keepdims=True)
    if one_pass:
        ex2 = jnp.mean(x * x, axis=1, keepdims=True)
        sigma = jnp.maximum(ex2 - mu * mu, 0.0)
        r = x - mu
    else:
        r = x - mu
        sigma = jnp.mean(r * r, axis=1, keepdims=True)
    o_ref[...] = (r * lax.rsqrt(sigma + eps)).astype(o_ref.dtype)


# ----------------------------------------------------------------------------
# Block selection
# ----------------------------------------------------------------------------
def _round_up(x, m):
    return ((x + m - 1) // m) * m


def _pick_blocks(B, C, T, itemsize, *, target_bytes=2 << 20,
                 min_row_bytes=2048, tiny_bytes=256 << 10):
    """Choose (b_blk, t_blk):
       - ~target_bytes of input moved per grid step (amortizes per-step cost)
       - contiguous DMA rows of >= min_row_bytes when T is tiled
       - >= 2 grid steps for non-trivial problems (v7x megacore)
       - t_blk is either a multiple of 128 (tail masked) or the full T."""
    total_bytes = B * C * T * itemsize
    min_t = max(128, _round_up(min_row_bytes // itemsize, 128))

    if total_bytes <= target_bytes:
        if total_bytes <= tiny_bytes:
            return B, T                       # tiny: single step
        if B >= 2:                            # guarantee >= 2 steps
            return -(-B // 2), T
        if T >= 2 * min_t:
            return 1, _round_up(-(-T // 2), 128)
        return B, T

    # Large problem: pick a lane-dense t_blk first, then fill the byte budget
    # with batch rows (channels are never tiled: they are the reduction axis).
    t_cap = (target_bytes // (C * itemsize)) // 128 * 128
    t_cap = max(128, t_cap)
    if C * min_t * itemsize <= 2 * target_bytes:
        t_cap = max(t_cap, min_t)             # keep DMA rows >= ~2 KiB
    t_blk = min(_round_up(T, 128), t_cap)
    if t_blk >= T:
        t_blk = T                             # full extent: no padding needed
    b_blk = min(B, max(1, target_bytes // (C * t_blk * itemsize)))
    return b_blk, t_blk


# ----------------------------------------------------------------------------
# Wrapper
# ----------------------------------------------------------------------------
def layer_norm(x, weight=None, bias=None, *, eps=1e-5,
               target_block_bytes=2 << 20):
    """PyTorch-style LayerNorm over dim=1 of a (B, C, T) tensor."""
    assert x.ndim == 3
    B, C, T = x.shape
    affine = weight is not None
    if affine and bias is None:
        bias = jnp.zeros((C,), jnp.float32)   # guard: weight without bias

    itemsize = jnp.dtype(x.dtype).itemsize
    b_blk, t_blk = _pick_blocks(B, C, T, itemsize,
                                target_bytes=target_block_bytes)
    grid = (pl.cdiv(B, b_blk), pl.cdiv(T, t_blk))
    x_spec = pl.BlockSpec((b_blk, C, t_blk), lambda b, t: (b, 0, t))

    # One-pass mean/var only for sub-32-bit inputs (v7x bf16 regime is not
    # purely HBM-bound); f32 keeps the two-pass form (HBM-bound, more robust).
    one_pass = itemsize < 4

    # Explicit VMEM budget: double-buffered in + out blocks, f32 temporaries
    # (upcast x, residual, y, reduction partials) plus params/slack.
    blk_elems = b_blk * C * t_blk
    blk_bytes = blk_elems * itemsize
    vmem_est = 4 * blk_bytes + 8 * blk_elems * 4 + (4 << 20)
    vmem_limit = int(min(max(vmem_est, 16 << 20), 48 << 20))

    compiler_params = pltpu.CompilerParams(
        dimension_semantics=("parallel", "parallel"),
        vmem_limit_bytes=vmem_limit)

    if affine:
        w2 = jnp.reshape(weight, (C, 1)).astype(jnp.float32)
        b2 = jnp.reshape(bias, (C, 1)).astype(jnp.float32)
        kernel = functools.partial(_ln_affine_kernel, eps=eps, one_pass=one_pass)
        in_specs = [x_spec,
                    pl.BlockSpec((C, 1), lambda b, t: (0, 0)),
                    pl.BlockSpec((C, 1), lambda b, t: (0, 0))]
        args = (x, w2, b2)
    else:
        kernel = functools.partial(_ln_plain_kernel, eps=eps, one_pass=one_pass)
        in_specs = [x_spec]
        args = (x,)

    return pl.pallas_call(
        kernel,
        out_shape=jax.ShapeDtypeStruct((B, C, T), x.dtype),
        grid=grid,
        in_specs=in_specs,
        out_specs=x_spec,
        compiler_params=compiler_params,
    )(*args)


# ----------------------------------------------------------------------------
# Pure-JAX reference mirroring the PyTorch forward
# ----------------------------------------------------------------------------
def reference(x, weight=None, bias=None, eps=1e-5):
    xf = x.astype(jnp.float32)
    mu = jnp.mean(xf, axis=1, keepdims=True)
    r = xf - mu
    sigma = jnp.mean(r * r, axis=1, keepdims=True)
    out = r / jnp.sqrt(sigma + eps)
    if weight is not None:
        out = out * weight.reshape(1, -1, 1).astype(jnp.float32)
        out = out + bias.reshape(1, -1, 1).astype(jnp.float32)
    return out.astype(x.dtype)


# ----------------------------------------------------------------------------
if __name__ == "__main__":
    key = jax.random.PRNGKey(0)

    # (B, C, T, dtype): tiny single-step / lane-dense single-step /
    # batch-split / batch-tail-masked non-128 T / bf16 one-pass + T-tail-masked
    configs = [
        (2, 4, 16, jnp.float32),
        (2, 64, 256, jnp.float32),
        (2, 128, 2048, jnp.float32),
        (3, 96, 1000, jnp.float32),
        (1, 64, 3000, jnp.bfloat16),
    ]
    for (B, C, T, dt) in configs:
        kx, kw, kb, key = jax.random.split(key, 4)
        x = jax.random.normal(kx, (B, C, T), jnp.float32).astype(dt)
        w = (1.0 + 0.1 * jax.random.normal(kw, (1, C, 1), jnp.float32)).astype(dt)
        b = (0.05 * jax.random.normal(kb, (1, C, 1), jnp.float32)).astype(dt)

        out = jax.block_until_ready(layer_norm(x, w, b))
        ref = reference(x, w, b)
        tol = 1e-4 if dt == jnp.float32 else 2e-2
        np.testing.assert_allclose(np.asarray(out, np.float32),
                                   np.asarray(ref, np.float32),
                                   rtol=tol, atol=tol)

    # affine=False path
    B, C, T = 2, 4, 16
    kx, key = jax.random.split(key)
    x = jax.random.normal(kx, (B, C, T), jnp.float32)
    out = jax.block_until_ready(layer_norm(x))
    np.testing.assert_allclose(np.asarray(out), np.asarray(reference(x)),
                               rtol=1e-4, atol=1e-4)

    print("KERNEL_OK")
</pallas_src>

<mosaic_0001>
module attributes {stable_mosaic.version = 11 : i64} {
  func.func @_ln_affine_kernel(%arg0: i32, %arg1: i32, %arg2: memref<2x4x16xf32, #tpu.memory_space<vmem>>, %arg3: memref<4x1xf32, #tpu.memory_space<vmem>>, %arg4: memref<4x1xf32, #tpu.memory_space<vmem>>, %arg5: memref<2x4x16xf32, #tpu.memory_space<vmem>>) attributes {dimension_semantics = [#tpu.dimension_semantics<parallel>, #tpu.dimension_semantics<parallel>], iteration_bounds = array<i64: 1, 1>, scalar_prefetch = 0 : i64, scratch_operands = 0 : i64, tpu.core_type = #tpu.core_type<tc>, window_params = [{transform_indices = @transform_0, window_bounds = array<i64: 2, 4, 16>}, {pipeline_mode = #tpu.pipeline_mode<synchronous>, transform_indices = @transform_1, window_bounds = array<i64: 4, 1>}, {pipeline_mode = #tpu.pipeline_mode<synchronous>, transform_indices = @transform_2, window_bounds = array<i64: 4, 1>}, {transform_indices = @transform_3, window_bounds = array<i64: 2, 4, 16>}]} {
    %c0 = arith.constant 0 : index
    %c0_0 = arith.constant 0 : index
    %c0_1 = arith.constant 0 : index
    %0 = vector.load %arg2[%c0, %c0_0, %c0_1] : memref<2x4x16xf32, #tpu.memory_space<vmem>>, vector<2x4x16xf32>
    %cst = arith.constant dense<0.000000e+00> : vector<2x16xf32>
    %1 = vector.multi_reduction <add>, %0, %cst [1] : vector<2x4x16xf32> to vector<2x16xf32>
    %2 = vector.shape_cast %1 : vector<2x16xf32> to vector<2x1x16xf32>
    %cst_2 = arith.constant 4.000000e+00 : f32
    %3 = vector.broadcast %cst_2 : f32 to vector<2x1x16xf32>
    %4 = arith.divf %2, %3 : vector<2x1x16xf32>
    %5 = vector.broadcast %4 : vector<2x1x16xf32> to vector<2x4x16xf32>
    %6 = arith.subf %0, %5 : vector<2x4x16xf32>
    %7 = arith.mulf %6, %6 : vector<2x4x16xf32>
    %cst_3 = arith.constant dense<0.000000e+00> : vector<2x16xf32>
    %8 = vector.multi_reduction <add>, %7, %cst_3 [1] : vector<2x4x16xf32> to vector<2x16xf32>
    %9 = vector.shape_cast %8 : vector<2x16xf32> to vector<2x1x16xf32>
    %cst_4 = arith.constant 4.000000e+00 : f32
    %10 = vector.broadcast %cst_4 : f32 to vector<2x1x16xf32>
    %11 = arith.divf %9, %10 : vector<2x1x16xf32>
    %cst_5 = arith.constant 9.99999974E-6 : f32
    %12 = vector.broadcast %cst_5 : f32 to vector<2x1x16xf32>
    %13 = arith.addf %11, %12 : vector<2x1x16xf32>
    %14 = math.rsqrt %13 : vector<2x1x16xf32>
    %15 = vector.broadcast %14 : vector<2x1x16xf32> to vector<2x4x16xf32>
    %16 = arith.mulf %6, %15 : vector<2x4x16xf32>
    %c0_6 = arith.constant 0 : index
    %c0_7 = arith.constant 0 : index
    %17 = vector.load %arg3[%c0_6, %c0_7] : memref<4x1xf32, #tpu.memory_space<vmem>>, vector<4x1xf32>
    %18 = vector.shape_cast %17 : vector<4x1xf32> to vector<1x4x1xf32>
    %19 = vector.broadcast %18 : vector<1x4x1xf32> to vector<2x4x16xf32>
    %20 = arith.mulf %16, %19 : vector<2x4x16xf32>
    %c0_8 = arith.constant 0 : index
    %c0_9 = arith.constant 0 : index
    %21 = vector.load %arg4[%c0_8, %c0_9] : memref<4x1xf32, #tpu.memory_space<vmem>>, vector<4x1xf32>
    %22 = vector.shape_cast %21 : vector<4x1xf32> to vector<1x4x1xf32>
    %23 = vector.broadcast %22 : vector<1x4x1xf32> to vector<2x4x16xf32>
    %24 = arith.addf %20, %23 : vector<2x4x16xf32>
    %c0_10 = arith.constant 0 : index
    %c0_11 = arith.constant 0 : index
    %c0_12 = arith.constant 0 : index
    %25 = vector.load %arg5[%c0_10, %c0_11, %c0_12] : memref<2x4x16xf32, #tpu.memory_space<vmem>>, vector<2x4x16xf32>
    tpu.vector_store %arg5[%c0_10, %c0_11, %c0_12], %24 {strides = array<i32>} : memref<2x4x16xf32, #tpu.memory_space<vmem>>, vector<2x4x16xf32>,
    return
  }
  func.func @transform_0(%arg0: i32, %arg1: i32) -> (i32, i32, i32) {
    %c0_i32 = arith.constant 0 : i32
    %c0_i32_0 = arith.constant 0 : i32
    return %arg0, %c0_i32, %arg1 : i32, i32, i32
  }
  func.func @transform_1(%arg0: i32, %arg1: i32) -> (i32, i32) {
    %c0_i32 = arith.constant 0 : i32
    %c0_i32_0 = arith.constant 0 : i32
    %c0_i32_1 = arith.constant 0 : i32
    return %c0_i32, %c0_i32_0 : i32, i32
  }
  func.func @transform_2(%arg0: i32, %arg1: i32) -> (i32, i32) {
    %c0_i32 = arith.constant 0 : i32
    %c0_i32_0 = arith.constant 0 : i32
    %c0_i32_1 = arith.constant 0 : i32
    return %c0_i32, %c0_i32_0 : i32, i32
  }
  func.func @transform_3(%arg0: i32, %arg1: i32) -> (i32, i32, i32) {
    %c0_i32 = arith.constant 0 : i32
    %c0_i32_0 = arith.constant 0 : i32
    return %arg0, %c0_i32, %arg1 : i32, i32, i32
  }
}

</mosaic_0001>

<bundles_post_ra>
// kernel: tpu_custom_call.1
= control target key start
LH: loop header
LB: loop body
LE: loop exit
PB: predicated region body
PF: predicated region fallthrough
CT: control target
= control target key end

     0   :  { %v128_v1 = vmov 0   ;;  %s182_s0 = inlined_call_operand.vmem [shape: f32[2,4,16], index: 0, kind: input, shape index: {}]   ;;  %s183_s1 = inlined_call_operand.vmem [shape: f32[4,1], index: 1, kind: input, shape index: {}]   ;;  %s184_s2 = inlined_call_operand.vmem [shape: f32[4,1], index: 2, kind: input, shape index: {}]   ;;  %s185_s3 = inlined_call_operand.hbm [shape: f32[2,4,16], index: 3, kind: output, shape index: {}]  }
   0x1   :  { %v61_v0 = vld [vmem:[%s183_s1] sm:$0xf]  ;;  %99 = vset.pattern.permute.xlu0 %v128_v1 }
   0x2   :  { %8 = vsyncpa [#allocation3], 0  ;;  %64 = vperm.xlu0 %99, %v61_v0   ;;  %v69_v2 = vld [vmem:[%s184_s2] sm:$0xf]  ;;  %vm17_vm0 = vcmask 125952  }
   0x3   :  { %v15_v3 = vld [vmem:[%s182_s0] sm:$0xf]  ;;  %v16_v4 = vld [vmem:[%s182_s0 + $0x4] sm:$0xf]  ;;  %s129_s0 = smov [#allocation2]  }
   0x4   :  { %v18_v5 = vsel %vm17_vm0, %v15_v3, 0.0  ;;  %v25_v6 = vsel %vm17_vm0, %v16_v4, 0.0  ;;  %s84_s1 = sshll.u32 %s129_s0, 4  ;;  %s85_s1 = int_to_ptr.vmem [resolvable:$true] %s84_s1 }
   0x5   :  { %v19_v7 = vrot.slane %v18_v5, 4  ;;  %v26_v8 = vrot.slane %v25_v6, 4  ;;  %s104_s2 = scalar_lea.vmem %s85_s1, 128  ;;  %p109_p1 = scmp.lt.s32.totalorder %s85_s1, %s85_s1 }
   0x6   :  { %72 = vperm.xlu0 %99, %v69_v2   ;;  %p105_p0 = scmp.ne.s32.totalorder %s85_s1, %s104_s2  ;;  %p110_p2 = scmp.lt.s32.totalorder %s104_s2, %s104_s2 }
   0x7   :  { %v20_v9 = vadd.f32 %v19_v7, %v18_v5  ;;  %v27_v10 = vadd.f32 %v26_v8, %v25_v6 }
   0x8   :  { %p111_p3 = por %p110_p2, %p109_p1 }
   0x9   :  { %v21_v11 = vrot.slane %v20_v9, 2  ;;  %v28_v12 = vrot.slane %v27_v10, 2 }
   0xa   :  { %p112_p4 = pnand %p111_p3, %p105_p0 }
   0xb   :  { %v22_v13 = vadd.f32 %v21_v11, %v20_v9  ;;  %v29_v14 = vadd.f32 %v28_v12, %v27_v10 }
   0xd   :  { %v23_v15 = vrot.slane %v22_v13, 1  ;;  %v30_v16 = vrot.slane %v29_v14, 1 }
   0xf   :  { %v24_v17 = vadd.f32 %v23_v15, %v22_v13  ;;  %v31_v18 = vadd.f32 %v30_v16, %v29_v14 }
  0x11   :  { %v33_v19 = vmul.f32 0.25, %v24_v17  ;;  %v34_v20 = vmul.f32 0.25, %v31_v18 }
  0x13   :  { %v35_v21 = vsub.f32 %v15_v3, %v33_v19  ;;  %v36_v22 = vsub.f32 %v16_v4, %v34_v20 }
  0x15   :  { %v37_v23 = vmul.f32 %v35_v21, %v35_v21  ;;  %v38_v24 = vmul.f32 %v36_v22, %v36_v22 }
  0x17   :  { %v39_v25 = vsel %vm17_vm0, %v37_v23, 0.0  ;;  %v46_v26 = vsel %vm17_vm0, %v38_v24, 0.0 }
  0x18   :  { %v40_v27 = vrot.slane %v39_v25, 4  ;;  %v47_v28 = vrot.slane %v46_v26, 4 }
  0x1a   :  { %v41_v29 = vadd.f32 %v40_v27, %v39_v25  ;;  %v48_v30 = vadd.f32 %v47_v28, %v46_v26 }
  0x1c   :  { %v42_v31 = vrot.slane %v41_v29, 2  ;;  %v49_v32 = vrot.slane %v48_v30, 2 }
  0x1e   :  { %v43_v33 = vadd.f32 %v42_v31, %v41_v29  ;;  %v50_v34 = vadd.f32 %v49_v32, %v48_v30 }
  0x20   :  { %v44_v35 = vrot.slane %v43_v33, 1  ;;  %v51_v36 = vrot.slane %v50_v34, 1 }
  0x22   :  { %v45_v37 = vadd.f32 %v44_v35, %v43_v33  ;;  %v52_v38 = vadd.f32 %v51_v36, %v50_v34 }
  0x24   :  { %v53_v39 = vmul.f32 0.25, %v45_v37  ;;  %v54_v40 = vmul.f32 0.25, %v52_v38 }
  0x26   :  { %v55_v41 = vadd.f32 1e-05, %v53_v39  ;;  %v56_v42 = vadd.f32 1e-05, %v54_v40 }
  0x28   :  { %100 = vrsqrt.f32 %v55_v41 }
  0x29   :  { %102 = vrsqrt.f32 %v56_v42 }
  0x32   :  { %v101_v43 = vpop.eup %100 }
  0x33   :  { %v103_v44 = vpop.eup %102  ;;  %v59_v45 = vmul.f32 %v101_v43, %v35_v21 }
  0x34   :  { %v60_v46 = vmul.f32 %v103_v44, %v36_v22 }
  0x81   :  { %v65_v47 = vpop.permute.xlu0 %64 }
  0x82   :  { %v67_v48 = vmul.f32 %v65_v47, %v59_v45  ;;  %v68_v49 = vmul.f32 %v65_v47, %v60_v46 }
  0x85   :  { %v73_v50 = vpop.permute.xlu0 %72 }
  0x86   :  { %v75_v51 = vadd.f32 %v73_v50, %v67_v48  ;;  %v76_v52 = vadd.f32 %v73_v50, %v68_v49 }
  0x88   :  { %77 = vst.msk [vmem:[#allocation2] sm:$0xf] %vm17_vm0, %v75_v51  ;;  %78 = vst.msk [vmem:[#allocation2 + $0x4] sm:$0xf] %vm17_vm0, %v76_v52 }
  0x89   :  { %115 = shalt.err (!%p112_p4)
}
  0x8a   :  { %s116_s22 = scalar_lea.hbm %s185_s3, 128 }
  0x8b   :  { %p117_p5 = scmp.ne.s32.totalorder %s185_s3, %s116_s22  ;;  %p120_p6 = scmp.lt.u32.totalorder %s116_s22, %s185_s3 }
  0x8d   :  { %p122_p7 = pnand %p120_p6, %p117_p5 }
  0x8f   :  { %125 = shalt.err (!%p122_p7)
}
  0x90   :  { %s130_s27 = smov 64   ;;  %s131_s28 = smov 4  }
  0x91   :  { %90 = dma.vmem_to_hbm [thread:$0]  %s85_s1, 128, %s185_s3, [#allocation3], %s130_s27, %s130_s27, %s131_s28  }
  0x92   :  { %126 = dma.done.wait [#allocation3], 128  }
  0x93   :  { %127 = vsyncadd [#allocation3], 4294967168 }
  0x94   :  { %94 = vsyncpa [#allocation3], 1 }

</bundles_post_ra>
